<compile_context>
chip_gen: v7x
topology: tpu7x:2x2x1
jax: 0.10.0
libtpu: 0.0.40
codegen_flags: <defaults>
</compile_context>

<pallas_src>
import functools

import jax
import jax.numpy as jnp
from jax.experimental import pallas as pl
from jax.experimental.pallas import tpu as pltpu

_EPSILON = 1e-15     # module's self.epsilon
_COS_EPS = 1e-8      # nn.CosineSimilarity default eps

_MAX_TILE_N = 4096           # graph rows per grid step
_SPLIT_ROWS = 2048           # force >=2 grid steps above this (v7x 2-TC sharding)
_VMEM_LIMIT = 32 * 1024 * 1024


def _round_up(x, m):
    return ((x + m - 1) // m) * m


def _choose_tile(n, max_tile=_MAX_TILE_N):
    """Pick a sublane-aligned row tile that bounds last-block waste (<8 rows/step)
    and keeps >=2 grid steps for large N so v7x's two TensorCores both work."""
    n8 = _round_up(max(int(n), 1), 8)
    steps = pl.cdiv(n8, max_tile)
    if steps == 1 and n8 >= _SPLIT_ROWS:
        steps = 2
    return _round_up(pl.cdiv(n8, steps), 8)


# ---------------------------------------------------------------------------
# Kernel 1 (hot path): cosine distance of each graph row to its *batch*
# prototype, with the prototype deduplicated to (B, D) and the per-row batch
# index derived in-kernel (row // num_shots via row-threshold compares).
# ---------------------------------------------------------------------------
def _proto_dist_dedup_kernel(x_ref, p_ref, dist_ref, *, num_shots):
    """x_ref   : (tile_n, D) graph embeddings (contiguous block of the (N, D) input)
    p_ref     : (B, D)       deduplicated per-batch prototypes (VMEM resident)
    dist_ref  : (tile_n, 1)  output: -cosine_similarity(x_i, proto[row_i // num_shots])
    """
    tile_n, d = x_ref.shape
    nb = p_ref.shape[0]

    x = x_ref[...].astype(jnp.float32)
    p = p_ref[...].astype(jnp.float32)

    # 1/max(||p_b||, eps) folded into the prototype rows (rsqrt -> EUP slot).
    p2 = jnp.sum(p * p, axis=1, keepdims=True)                       # (B, 1)
    p_hat = p * jax.lax.rsqrt(jnp.maximum(p2, _COS_EPS * _COS_EPS))  # (B, D)

    # Global row indices for this block; batch b owns rows [b*num_shots, (b+1)*num_shots).
    row0 = pl.program_id(0) * tile_n
    rows = row0 + jax.lax.broadcasted_iota(jnp.int32, (tile_n, 1), 0)
    rows = jnp.broadcast_to(rows, (tile_n, d))                       # (tile_n, D)

    # Static B-way select chain (rows are ascending, so later thresholds win).
    # Exact, division-free, and MXU-free -- the recommended path for tiny B.
    p_sel = jnp.broadcast_to(p_hat[0:1, :], (tile_n, d))
    for b in range(1, nb):
        p_sel = jnp.where(rows >= b * num_shots, p_hat[b:b + 1, :], p_sel)

    dot = jnp.sum(x * p_sel, axis=1, keepdims=True)                  # (tile_n, 1)
    x2 = jnp.sum(x * x, axis=1, keepdims=True)
    inv_xn = jax.lax.rsqrt(jnp.maximum(x2, _COS_EPS * _COS_EPS))
    dist_ref[...] = -(dot * inv_xn)                                  # distance = -cos


def cosine_distance_to_batch_prototypes(x, proto, num_shots, tile_n=None):
    """dist[i] = -cosine_similarity(x[i], proto[i // num_shots]).

    x: (N, D) (any float dtype; streamed as-is, upcast in-kernel),
    proto: (B, D), N == B * num_shots.  Returns (N, 1) float32."""
    n, d = x.shape
    nb, dp = proto.shape
    assert dp == d
    assert n == nb * num_shots
    if tile_n is None:
        tile_n = _choose_tile(n)
    grid = (pl.cdiv(n, tile_n),)   # ragged last block handled by Pallas; no jnp.pad
    kernel = functools.partial(_proto_dist_dedup_kernel, num_shots=num_shots)
    return pl.pallas_call(
        kernel,
        out_shape=jax.ShapeDtypeStruct((n, 1), jnp.float32),
        grid=grid,
        in_specs=[pl.BlockSpec((tile_n, d), lambda i: (i, 0)),
                  pl.BlockSpec((nb, d), lambda i: (0, 0))],
        out_specs=pl.BlockSpec((tile_n, 1), lambda i: (i, 0)),
        compiler_params=pltpu.CompilerParams(
            dimension_semantics=("parallel",),
            vmem_limit_bytes=_VMEM_LIMIT),
    )(x, proto)


# ---------------------------------------------------------------------------
# Kernel 2 (API parity): GNNEmbeddingLearner.prototype_subgraph_distances,
# which takes an already row-expanded prototype and also returns the
# log-ratio "similarity".
# ---------------------------------------------------------------------------
def _proto_dist_pair_kernel(x_ref, p_ref, dist_ref, sim_ref):
    x = x_ref[...].astype(jnp.float32)                               # (tile_n, D)
    p = p_ref[...].astype(jnp.float32)                               # (tile_n, D)
    dot = jnp.sum(x * p, axis=1, keepdims=True)
    x2 = jnp.sum(x * x, axis=1, keepdims=True)
    p2 = jnp.sum(p * p, axis=1, keepdims=True)
    inv = (jax.lax.rsqrt(jnp.maximum(x2, _COS_EPS * _COS_EPS))
           * jax.lax.rsqrt(jnp.maximum(p2, _COS_EPS * _COS_EPS)))
    dist = -(dot * inv)
    dist_ref[...] = dist
    # Matches torch.log((distance+1)/(distance+eps)); as in PyTorch this is NaN
    # whenever cosine similarity > eps (negative denominator).
    sim_ref[...] = jnp.log((dist + 1.0) / (dist + _EPSILON))


def prototype_subgraph_distances(x, prototype, tile_n=None):
    """Pallas version of GNNEmbeddingLearner.prototype_subgraph_distances.

    x, prototype: (N, D).  Returns (similarity, distance), each (N,) float32."""
    n, d = x.shape
    assert prototype.shape == (n, d)
    if tile_n is None:
        tile_n = _choose_tile(n)
    grid = (pl.cdiv(n, tile_n),)
    dist, sim = pl.pallas_call(
        _proto_dist_pair_kernel,
        out_shape=(jax.ShapeDtypeStruct((n, 1), jnp.float32),
                   jax.ShapeDtypeStruct((n, 1), jnp.float32)),
        grid=grid,
        in_specs=[pl.BlockSpec((tile_n, d), lambda i: (i, 0)),
                  pl.BlockSpec((tile_n, d), lambda i: (i, 0))],
        out_specs=(pl.BlockSpec((tile_n, 1), lambda i: (i, 0)),
                   pl.BlockSpec((tile_n, 1), lambda i: (i, 0))),
        compiler_params=pltpu.CompilerParams(
            dimension_semantics=("parallel",),
            vmem_limit_bytes=_VMEM_LIMIT),
    )(x, prototype)
    # PyTorch method returns (similarity, distance)
    return sim[:, 0], dist[:, 0]


# ---------------------------------------------------------------------------
# Module-level glue
# ---------------------------------------------------------------------------
def init_params(key, emb_dim=32, num_prototypes=2, num_rels_bg=8, num_nodes=16):
    """Deterministic parameter init mirroring the module's __init__ shapes.

    (These parameters feed the RGCN encoders / last_layer and are not touched
    by the use_subgraph=False forward path implemented here.)"""
    k0, k1, k2 = jax.random.split(key, 3)
    return {
        "edge_embedding": jax.random.normal(k0, (num_rels_bg + 1, emb_dim), jnp.float32),
        "node_embedding": jax.random.normal(k1, (num_nodes, emb_dim), jnp.float32),
        "last_layer_w": 0.1 * jax.random.normal(k2, (1, num_prototypes), jnp.float32),
        "last_layer_b": jnp.zeros((1,), jnp.float32),
    }


def gnn_embedding_learner_forward(params, graph_emb, graph_emb_neg, prototype,
                                  num_pos, num_neg, edge_mask_pos=None,
                                  edge_mask_neg=None, size_loss_beta=0):
    """Mirrors GNNEmbeddingLearner.forward with use_subgraph=False.

    graph_emb     : (B*num_pos, D)  -- stands in for self.rgcn(support_subgraphs)
    graph_emb_neg : (B*num_neg, D)  -- stands in for self.rgcn(support_negative_subgraphs)
    prototype     : (B, 1, D)
    """
    del params, edge_mask_pos, edge_mask_neg, size_loss_beta  # unused on this path
    batch_size = prototype.shape[0]
    dim = prototype.shape[2]
    extra_loss = jnp.asarray(0, dtype=jnp.int32)  # torch.tensor(0)

    # Instead of materialising prototype.expand(-1, num_shots, -1).reshape(...)
    # (a pure-redundancy HBM stream), pass the deduplicated (B, D) prototype;
    # the kernel derives each row's batch index from its position.
    # Pos and neg graphs go through two pallas_calls (no HBM concatenate pass).
    proto = prototype.reshape(batch_size, dim)

    # The unused "prototype_activations" (log-ratio similarity) of the PyTorch
    # forward are intentionally not computed here.
    pos_distances = cosine_distance_to_batch_prototypes(graph_emb, proto, num_pos)
    neg_distances = cosine_distance_to_batch_prototypes(graph_emb_neg, proto, num_neg)

    edgemask = None
    edgemask_neg = None  # (PyTorch would hit a NameError here when use_subgraph=False)
    return (pos_distances,            # already (B*num_pos, 1)
            neg_distances,            # already (B*num_neg, 1)
            extra_loss,
            edgemask,
            edgemask_neg,
            graph_emb,
            graph_emb_neg)


if __name__ == "__main__":
    key = jax.random.PRNGKey(0)
    B, num_pos, num_neg, D = 2, 4, 4, 32

    k1, k2, k3, k4 = jax.random.split(key, 4)
    params = init_params(k4, emb_dim=D)
    graph_emb = jax.random.normal(k1, (B * num_pos, D), jnp.float32)
    graph_emb_neg = jax.random.normal(k2, (B * num_neg, D), jnp.float32)
    prototype = jax.random.normal(k3, (B, 1, D), jnp.float32)

    out = gnn_embedding_learner_forward(
        params, graph_emb, graph_emb_neg, prototype, num_pos, num_neg)
    pos_d, neg_d, extra_loss = out[0], out[1], out[2]
    jax.block_until_ready((pos_d, neg_d, extra_loss))

    # Reference check against plain-JAX cosine similarity (torch semantics).
    def ref_dist(x, p):
        x = x.astype(jnp.float32)
        p = p.astype(jnp.float32)
        xn = jnp.maximum(jnp.linalg.norm(x, axis=-1), _COS_EPS)
        pn = jnp.maximum(jnp.linalg.norm(p, axis=-1), _COS_EPS)
        return -(jnp.sum(x * p, axis=-1) / (xn * pn))

    proto_pos = jnp.broadcast_to(prototype, (B, num_pos, D)).reshape(B * num_pos, D)
    proto_neg = jnp.broadcast_to(prototype, (B, num_neg, D)).reshape(B * num_neg, D)
    ref_pos = ref_dist(graph_emb, proto_pos).reshape(-1, 1)
    ref_neg = ref_dist(graph_emb_neg, proto_neg).reshape(-1, 1)

    assert pos_d.shape == (B * num_pos, 1) and neg_d.shape == (B * num_neg, 1)
    assert bool(jnp.allclose(pos_d, ref_pos, atol=1e-5, rtol=1e-5))
    assert bool(jnp.allclose(neg_d, ref_neg, atol=1e-5, rtol=1e-5))
    assert bool(jnp.all(jnp.abs(pos_d) <= 1.0 + 1e-5))
    assert bool(jnp.all(jnp.abs(neg_d) <= 1.0 + 1e-5))

    # bf16 passthrough: the wrapper streams bf16 blocks unchanged (half the HBM
    # traffic); the kernel upcasts in VMEM so the math is identical to the
    # f32 reference evaluated on the bf16-rounded inputs.
    ge_bf16 = graph_emb.astype(jnp.bfloat16)
    d_bf16 = cosine_distance_to_batch_prototypes(
        ge_bf16, prototype.reshape(B, D), num_pos)
    jax.block_until_ready(d_bf16)
    ref_bf16 = ref_dist(ge_bf16, proto_pos).reshape(-1, 1)
    assert bool(jnp.allclose(d_bf16, ref_bf16, atol=1e-5, rtol=1e-5))

    # Larger multi-step + ragged-grid check (no padding in the wrapper; the last
    # block overhangs the array and its out-of-bounds rows are discarded).
    B2, shots2 = 3, 700
    kx, kp = jax.random.split(jax.random.PRNGKey(1))
    x_big = jax.random.normal(kx, (B2 * shots2, D), jnp.float32)
    proto_big = jax.random.normal(kp, (B2, D), jnp.float32)
    d_big = cosine_distance_to_batch_prototypes(x_big, proto_big, shots2)
    jax.block_until_ready(d_big)
    ref_big = ref_dist(x_big, jnp.repeat(proto_big, shots2, axis=0)).reshape(-1, 1)
    assert d_big.shape == (B2 * shots2, 1)
    assert bool(jnp.allclose(d_big, ref_big, atol=1e-5, rtol=1e-5))

    # Also exercise the standalone prototype_subgraph_distances kernel (API parity).
    sim, dist = prototype_subgraph_distances(graph_emb, proto_pos)
    jax.block_until_ready((sim, dist))
    assert bool(jnp.allclose(dist, ref_pos[:, 0], atol=1e-5, rtol=1e-5))

    print("KERNEL_OK")
</pallas_src>

<mosaic_0001>
module attributes {stable_mosaic.version = 11 : i64} {
  func.func @_proto_dist_dedup_kernel(%arg0: i32, %arg1: memref<8x32xf32, #tpu.memory_space<vmem>>, %arg2: memref<2x32xf32, #tpu.memory_space<vmem>>, %arg3: memref<8x1xf32, #tpu.memory_space<vmem>>) attributes {dimension_semantics = [#tpu.dimension_semantics<parallel>], iteration_bounds = array<i64: 1>, scalar_prefetch = 0 : i64, scratch_operands = 0 : i64, tpu.core_type = #tpu.core_type<tc>, window_params = [{transform_indices = @transform_0, window_bounds = array<i64: 8, 32>}, {pipeline_mode = #tpu.pipeline_mode<synchronous>, transform_indices = @transform_1, window_bounds = array<i64: 2, 32>}, {transform_indices = @transform_2, window_bounds = array<i64: 8, 1>}]} {
    %c0 = arith.constant 0 : index
    %c0_0 = arith.constant 0 : index
    %0 = vector.load %arg1[%c0, %c0_0] : memref<8x32xf32, #tpu.memory_space<vmem>>, vector<8x32xf32>
    %c0_1 = arith.constant 0 : index
    %c0_2 = arith.constant 0 : index
    %1 = vector.load %arg2[%c0_1, %c0_2] : memref<2x32xf32, #tpu.memory_space<vmem>>, vector<2x32xf32>
    %2 = arith.mulf %1, %1 : vector<2x32xf32>
    %cst = arith.constant dense<0.000000e+00> : vector<2xf32>
    %3 = vector.multi_reduction <add>, %2, %cst [1] : vector<2x32xf32> to vector<2xf32>
    %4 = vector.shape_cast %3 : vector<2xf32> to vector<2x1xf32>
    %cst_3 = arith.constant 1.000000e-16 : f32
    %5 = vector.broadcast %cst_3 : f32 to vector<2x1xf32>
    %6 = arith.maximumf %4, %5 : vector<2x1xf32>
    %7 = math.rsqrt %6 : vector<2x1xf32>
    %8 = vector.broadcast %7 : vector<2x1xf32> to vector<2x32xf32>
    %9 = arith.mulf %1, %8 : vector<2x32xf32>
    %c8_i32 = arith.constant 8 : i32
    %10 = arith.muli %arg0, %c8_i32 : i32
    %11 = tpu.iota {dimensions = array<i32: 0>} : vector<8x1xi32>
    %12 = vector.broadcast %10 : i32 to vector<8x1xi32>
    %13 = arith.addi %12, %11 : vector<8x1xi32>
    %14 = vector.shape_cast %13 : vector<8x1xi32> to vector<8x1xi32>
    %15 = vector.broadcast %14 : vector<8x1xi32> to vector<8x32xi32>
    %16 = vector.extract_strided_slice %9 {offsets = [0, 0], sizes = [1, 32], strides = [1, 1]} : vector<2x32xf32> to vector<1x32xf32>
    %17 = vector.shape_cast %16 : vector<1x32xf32> to vector<1x32xf32>
    %18 = vector.broadcast %17 : vector<1x32xf32> to vector<8x32xf32>
    %c4_i32 = arith.constant 4 : i32
    %19 = vector.broadcast %c4_i32 : i32 to vector<8x32xi32>
    %20 = arith.cmpi sge, %15, %19 : vector<8x32xi32>
    %21 = vector.extract_strided_slice %9 {offsets = [1, 0], sizes = [1, 32], strides = [1, 1]} : vector<2x32xf32> to vector<1x32xf32>
    %22 = vector.shape_cast %21 : vector<1x32xf32> to vector<1x32xf32>
    %23 = vector.broadcast %22 : vector<1x32xf32> to vector<8x32xf32>
    %24 = arith.select %20, %23, %18 : vector<8x32xi1>, vector<8x32xf32>
    %25 = arith.mulf %0, %24 : vector<8x32xf32>
    %cst_4 = arith.constant dense<0.000000e+00> : vector<8xf32>
    %26 = vector.multi_reduction <add>, %25, %cst_4 [1] : vector<8x32xf32> to vector<8xf32>
    %27 = vector.shape_cast %26 : vector<8xf32> to vector<8x1xf32>
    %28 = arith.mulf %0, %0 : vector<8x32xf32>
    %cst_5 = arith.constant dense<0.000000e+00> : vector<8xf32>
    %29 = vector.multi_reduction <add>, %28, %cst_5 [1] : vector<8x32xf32> to vector<8xf32>
    %30 = vector.shape_cast %29 : vector<8xf32> to vector<8x1xf32>
    %cst_6 = arith.constant 1.000000e-16 : f32
    %31 = vector.broadcast %cst_6 : f32 to vector<8x1xf32>
    %32 = arith.maximumf %30, %31 : vector<8x1xf32>
    %33 = math.rsqrt %32 : vector<8x1xf32>
    %34 = arith.mulf %27, %33 : vector<8x1xf32>
    %cst_7 = arith.constant 0.000000e+00 : f32
    %35 = vector.broadcast %cst_7 : f32 to vector<8x1xf32>
    %36 = arith.subf %35, %34 : vector<8x1xf32>
    %c0_8 = arith.constant 0 : index
    %c0_9 = arith.constant 0 : index
    %37 = vector.load %arg3[%c0_8, %c0_9] : memref<8x1xf32, #tpu.memory_space<vmem>>, vector<8x1xf32>
    tpu.vector_store %arg3[%c0_8, %c0_9], %36 {strides = array<i32>} : memref<8x1xf32, #tpu.memory_space<vmem>>, vector<8x1xf32>,
    return
  }
  func.func @transform_0(%arg0: i32) -> (i32, i32) {
    %c0_i32 = arith.constant 0 : i32
    %c0_i32_0 = arith.constant 0 : i32
    return %arg0, %c0_i32 : i32, i32
  }
  func.func @transform_1(%arg0: i32) -> (i32, i32) {
    %c0_i32 = arith.constant 0 : i32
    %c0_i32_0 = arith.constant 0 : i32
    %c0_i32_1 = arith.constant 0 : i32
    return %c0_i32, %c0_i32_0 : i32, i32
  }
  func.func @transform_2(%arg0: i32) -> (i32, i32) {
    %c0_i32 = arith.constant 0 : i32
    %c0_i32_0 = arith.constant 0 : i32
    return %arg0, %c0_i32 : i32, i32
  }
}

</mosaic_0001>

<bundles_post_ra>
// kernel: tpu_custom_call.1
= control target key start
LH: loop header
LB: loop body
LE: loop exit
PB: predicated region body
PF: predicated region fallthrough
CT: control target
= control target key end

     0   :  { %7 = vsyncpa [#allocation3], 0  ;;  %s97_s9 = smov [#allocation2]   ;;  %s133_s0 = inlined_call_operand.hbm [shape: f32[8,32], index: 0, kind: input, shape index: {}]   ;;  %s134_s1 = inlined_call_operand.vmem [shape: f32[2,32], index: 1, kind: input, shape index: {}]   ;;  %s135_s2 = inlined_call_operand.vmem [shape: f32[8,1], index: 2, kind: output, shape index: {}]  }
   0x1   :  { %s14_s10 = sshll.u32 %s97_s9, 4  ;;  %s73_s13 = scalar_lea.hbm %s133_s0, 128  ;;  %s15_s10 = int_to_ptr.vmem [resolvable:$true] %s14_s10 }
   0x2   :  { %p74_p0 = scmp.ne.s32.totalorder %s133_s0, %s73_s13  ;;  %p77_p1 = scmp.lt.u32.totalorder %s73_s13, %s133_s0 }
   0x4   :  { %p79_p2 = pnand %p77_p1, %p74_p0 }
   0x6   :  { %82 = shalt.err (!%p79_p2)
}
   0x7   :  { %s83_s18 = scalar_lea.vmem %s15_s10, 128  ;;  %p88_p4 = scmp.lt.s32.totalorder %s15_s10, %s15_s10 }
   0x8   :  { %p84_p3 = scmp.ne.s32.totalorder %s15_s10, %s83_s18  ;;  %p89_p5 = scmp.lt.s32.totalorder %s83_s18, %s83_s18 }
   0xa   :  { %p90_p6 = por %p89_p5, %p88_p4 }
   0xc   :  { %p91_p7 = pnand %p90_p6, %p84_p3 }
   0xe   :  { %94 = shalt.err (!%p91_p7)
}
   0xf   :  { %17 = dma.hbm_to_vmem [thread:$0]  %s133_s0, 128, %s15_s10, [#allocation3]  }
  0x10   :  { %95 = dma.done.wait [#allocation3], 128  }
  0x11   :  { %96 = vsyncadd [#allocation3], 4294967168  ;;  %v24_v0 = vld [vmem:[%s134_s1] sm:$0x3]  ;;  %vm26_vm0 = vcmask 254976   ;;  %vm49_vm1 = vcmask 261120   ;;  %v34_v8 = vlaneseq }
  0x12   :  { %v25_v1 = vmul.f32 %v24_v0, %v24_v0  ;;  %v23_v3 = vld [vmem:[#allocation2] sm:$0xff]  ;;  %vm61_vm3 = vcmask 7168  }
  0x13   :  { %v53_v4 = vmul.f32 %v23_v3, %v23_v3  ;;  %v35_v9 = vshrl.u32 %v34_v8, 7 }
  0x14   :  { %v27_v2 = vsel %vm26_vm0, %v25_v1, 0.0 }
  0x15   :  { %28 = vadd.xlane.f32.xlu0 %v27_v2  ;;  %v54_v5 = vsel %vm49_vm1, %v53_v4, 0.0  ;;  %v40_v10 = vsub.s32 0, %v35_v9  ;;  %v45_v11 = vsub.s32 1, %v35_v9  ;;  %vm42_vm2 = vcmp.ge.s32.totalorder %v35_v9, 4 }
  0x19   :  { %55 = vadd.xlane.f32.xlu0 %v54_v5 }
  0xa2   :  { %v29_v6 = vpop.xlane.xlu0 %28 }
  0xa3   :  { %v30_v7 = vmax.f32 %v29_v6, 1e-16 }
  0xa5   :  { %69 = vrsqrt.f32 %v30_v7 }
  0xa6   :  { %v56_v19 = vpop.xlane.xlu0 %55 }
  0xa7   :  { %v57_v20 = vmax.f32 %v56_v19, 1e-16 }
  0xa9   :  { %71 = vrsqrt.f32 %v57_v20 }
  0xaf   :  { %v70_v12 = vpop.eup %69 }
  0xb0   :  { %v32_v13 = vmul.f32 %v70_v12, %v24_v0 }
  0xb2   :  { %v41_v14 = vrot.slane %v32_v13, %v40_v10  ;;  %v46_v15 = vrot.slane %v32_v13, %v45_v11 }
  0xb3   :  { %v72_v21 = vpop.eup %71 }
  0xb4   :  { %v47_v16 = vsel %vm42_vm2, %v46_v15, %v41_v14 }
  0xb5   :  { %v48_v17 = vmul.f32 %v47_v16, %v23_v3 }
  0xb7   :  { %v50_v18 = vsel %vm49_vm1, %v48_v17, 0.0 }
  0xb8   :  { %51 = vadd.xlane.f32.xlu1 %v50_v18 }
 0x145   :  { %v52_v22 = vpop.xlane.xlu1 %51 }
 0x146   :  { %v59_v23 = vmul.f32 %v72_v21, %v52_v22 }
 0x148   :  { %v60_v24 = vsub.f32 0.0, %v59_v23 }
 0x14a   :  { %62 = vst.msk [vmem:[%s135_s2] sm:$0xff] %vm61_vm3, %v60_v24 }
 0x14b   :  { %67 = vsyncpa [#allocation3], 1 }

</bundles_post_ra>
